<compile_context>
chip_gen: v7x
topology: tpu7x:2x2x1
jax: 0.10.0
libtpu: 0.0.40
codegen_flags: <defaults>
</compile_context>

<pallas_src>
import math
import jax
import jax.numpy as jnp
from jax.experimental import pallas as pl
from jax.experimental.pallas import tpu as pltpu


_COLLAPSE_MAX_D = 256                 # above this, the factored 2-matmul form wins
_VMEM_LIMIT_BYTES = 48 * 1024 * 1024  # explicit scoped-VMEM budget (safe on v5e/v6e/v7x)
_HAS_BUFFERED = hasattr(pl, "Buffered")


# ---------------------------------------------------------------------------
# Kernels
# ---------------------------------------------------------------------------

def _affine_kernel(x_ref, w_ref, b_ref, o_ref):
    # o = x @ Wc + bc   (Wc is the pre-collapsed (L, L) map, bc is (1, L))
    y = jnp.dot(x_ref[...], w_ref[...], preferred_element_type=jnp.float32)
    o_ref[...] = (y + b_ref[...]).astype(o_ref.dtype)


def _factored_kernel(x_ref, w12_ref, w3_ref, b_ref, o_ref):
    # Large-d path: o = (x @ W12) @ W3 + bc,  W12 = W1@W2 pre-folded (rank <= 8).
    h = jnp.dot(x_ref[...], w12_ref[...], preferred_element_type=jnp.float32)
    y = jnp.dot(h, w3_ref[...], preferred_element_type=jnp.float32) + b_ref[...]
    o_ref[...] = y.astype(o_ref.dtype)


# ---------------------------------------------------------------------------
# Tiling helpers
# ---------------------------------------------------------------------------

def _round_up(a, b):
    return (a + b - 1) // b * b


def _pick_row_tile(n_rows, lane_width, itemsize):
    """~6 MiB input tile (amortizes the ~0.35us per-grid-step overhead),
    multiple of 8 sublanes, capped at 8192 rows, never bigger than the
    (sublane-rounded) row count; keeps >= 2 grid steps when there is enough
    work so the 'parallel' axis can shard across both TensorCores."""
    target_bytes = 6 << 20
    tile = (target_bytes // max(lane_width * itemsize, 1)) // 8 * 8
    tile = max(8, min(8192, tile))
    tile = min(tile, _round_up(max(n_rows, 1), 8))
    while tile > 512 and pl.cdiv(max(n_rows, 1), tile) < 2:
        tile = max(512, ((tile // 2 + 7) // 8) * 8)
    return tile


def _resident_spec(shape):
    """Full-array block, constant index_map (VMEM-resident across the grid).
    Single-buffered when the installed JAX supports pipeline_mode."""
    ndim = len(shape)
    idx = lambda i: (0,) * ndim
    if _HAS_BUFFERED:
        try:
            return pl.BlockSpec(shape, idx, pipeline_mode=pl.Buffered(1))
        except TypeError:
            pass
    return pl.BlockSpec(shape, idx)


# ---------------------------------------------------------------------------
# pallas_call wrappers
# ---------------------------------------------------------------------------

def _run_affine(x2d, wc, bc):
    """Tiled  y = x2d @ wc + bc.  x2d: (n, L), wc: (L, L), bc: (1, L).
    No wrapper-side padding: the ragged last row-block relies on Pallas'
    masked out-of-bounds writes (row i of y depends only on row i of x)."""
    n, L = x2d.shape
    itemsize = jnp.dtype(x2d.dtype).itemsize
    row_tile = _pick_row_tile(n, L, itemsize)
    grid = (pl.cdiv(n, row_tile),)

    return pl.pallas_call(
        _affine_kernel,
        out_shape=jax.ShapeDtypeStruct((n, L), x2d.dtype),
        grid_spec=pltpu.PrefetchScalarGridSpec(
            num_scalar_prefetch=0,
            grid=grid,
            in_specs=[
                pl.BlockSpec((row_tile, L), lambda i: (i, 0)),  # x tile
                _resident_spec((L, L)),                         # Wc (resident, 1-buf)
                _resident_spec((1, L)),                         # bc (resident, 1-buf)
            ],
            out_specs=pl.BlockSpec((row_tile, L), lambda i: (i, 0)),
        ),
        compiler_params=pltpu.CompilerParams(
            dimension_semantics=("parallel",),
            vmem_limit_bytes=_VMEM_LIMIT_BYTES),
        cost_estimate=pl.CostEstimate(
            flops=int(2 * n * L * L),
            transcendentals=0,
            bytes_accessed=int((2 * n * L + L * L + L) * itemsize)),
    )(x2d, wc, bc)


def _run_affine_lane_packed(x2d, wc, bc, d):
    """Lane-dense variant for d dividing 128: pack rep = 128//d samples per
    128-lane row and apply a block-diagonal (128, 128) collapsed weight.
    Only the (at most rep-1) tail rows are padded so the reshape is exact."""
    rep = 128 // d
    n = x2d.shape[0]
    n_pad = _round_up(n, rep)
    if n_pad != n:
        x2d = jnp.pad(x2d, ((0, n_pad - n), (0, 0)))
    x_big = x2d.reshape(n_pad // rep, rep * d)          # contiguous reshape

    wc_big = jnp.kron(jnp.eye(rep, dtype=wc.dtype), wc)  # (128, 128) block-diag
    bc_big = jnp.tile(bc, (1, rep))                       # (1, 128)

    out_big = _run_affine(x_big, wc_big, bc_big)
    return out_big.reshape(n_pad, d)[:n]


def _run_factored(x2d, w12, w3, bc):
    """Large-d path: tiled  y = (x @ W12) @ W3 + bc  with W12 = W1@W2 pre-folded."""
    n, d = x2d.shape
    nodes = w12.shape[1]
    itemsize = jnp.dtype(x2d.dtype).itemsize
    row_tile = _pick_row_tile(n, d, itemsize)
    grid = (pl.cdiv(n, row_tile),)

    return pl.pallas_call(
        _factored_kernel,
        out_shape=jax.ShapeDtypeStruct((n, d), x2d.dtype),
        grid_spec=pltpu.PrefetchScalarGridSpec(
            num_scalar_prefetch=0,
            grid=grid,
            in_specs=[
                pl.BlockSpec((row_tile, d), lambda i: (i, 0)),  # x tile
                _resident_spec((d, nodes)),                     # W12 (resident)
                _resident_spec((nodes, d)),                     # W3  (resident)
                _resident_spec((1, d)),                         # bc  (resident)
            ],
            out_specs=pl.BlockSpec((row_tile, d), lambda i: (i, 0)),
        ),
        compiler_params=pltpu.CompilerParams(
            dimension_semantics=("parallel",),
            vmem_limit_bytes=_VMEM_LIMIT_BYTES),
        cost_estimate=pl.CostEstimate(
            flops=int(4 * n * d * nodes),
            transcendentals=0,
            bytes_accessed=int((2 * n * d + 2 * d * nodes + d) * itemsize)),
    )(x2d, w12, w3, bc)


# ---------------------------------------------------------------------------
# Forward pass
# ---------------------------------------------------------------------------

def ae_forward(x, params, d):
    """x: any shape with total elements divisible by d (mirrors x.view(-1, d)).
    Returns (-1, 1, d) like the PyTorch module."""
    w1, b1, w2, b2, w3, b3 = params
    x2d = x.reshape(-1, d)

    # Fold all biases into one (tiny, done once in the wrapper).
    bc = (b1 @ w2) @ w3 + b2 @ w3 + b3  # (1, d)

    if d <= _COLLAPSE_MAX_D:
        wc = (w1 @ w2) @ w3  # (d, d) collapsed affine map
        if d < 128 and 128 % d == 0:
            out2d = _run_affine_lane_packed(x2d, wc, bc, d)
        else:
            out2d = _run_affine(x2d, wc, bc)
    else:
        w12 = w1 @ w2        # (d, nodes), rank <= 8 factored form
        out2d = _run_factored(x2d, w12, w3, bc)

    return out2d.reshape(-1, 1, d)


# ---------------------------------------------------------------------------
# Parameter init (mirrors the PyTorch module)
# ---------------------------------------------------------------------------

def _xavier_uniform(key, fan_in, fan_out, dtype=jnp.float32):
    bound = math.sqrt(6.0 / (fan_in + fan_out))
    # Sampled in (out, in) like torch's nn.Linear.weight, then transposed.
    w = jax.random.uniform(key, (fan_out, fan_in), dtype, -bound, bound)
    return w.T  # (in, out) for the kernel


def _linear_bias(key, fan_in, fan_out, dtype=jnp.float32):
    # torch default bias init: U(-1/sqrt(fan_in), 1/sqrt(fan_in))
    bound = 1.0 / math.sqrt(fan_in)
    return jax.random.uniform(key, (1, fan_out), dtype, -bound, bound)


def init_ae_params(key, d):
    nodes = 2 if d <= 100 else 8
    k = jax.random.split(key, 6)
    w1 = _xavier_uniform(k[0], d, nodes)
    b1 = _linear_bias(k[1], d, nodes)
    w2 = _xavier_uniform(k[2], nodes, nodes)
    b2 = _linear_bias(k[3], nodes, nodes)
    w3 = _xavier_uniform(k[4], nodes, d)
    b3 = _linear_bias(k[5], nodes, d)
    return (w1, b1, w2, b2, w3, b3)


def _reference(x, params, d):
    w1, b1, w2, b2, w3, b3 = params
    y = ((x.reshape(-1, d) @ w1 + b1) @ w2 + b2) @ w3 + b3
    return y.reshape(-1, 1, d)


def _check(x, params, d, tag):
    out = ae_forward(x, params, d)
    jax.block_until_ready(out)
    ref = _reference(x, params, d)
    n = x.reshape(-1, d).shape[0]
    assert out.shape == (n, 1, d), (tag, out.shape)
    assert jnp.allclose(out, ref, atol=2e-5, rtol=2e-5), f"mismatch vs reference ({tag})"


if __name__ == "__main__":
    key = jax.random.PRNGKey(0)
    k1, k2, k3, k4, kp1, kp2, kp3 = jax.random.split(key, 7)

    # 1) small d dividing 128 -> lane-packed path, batch a multiple of 128//d
    d_a = 16
    params_a = init_ae_params(kp1, d_a)
    x_a = jax.random.normal(k1, (8, d_a), dtype=jnp.float32)
    _check(x_a, params_a, d_a, "lane-packed exact")

    # 2) same path with a ragged batch (exercises the small tail pad)
    x_b = jax.random.normal(k2, (13, d_a), dtype=jnp.float32)
    _check(x_b, params_a, d_a, "lane-packed ragged")

    # 3) d not dividing 128 -> plain collapsed path, ragged row-blocks
    #    (exercises the no-pad, masked-OOB-write last block)
    d_c = 40
    params_c = init_ae_params(kp2, d_c)
    x_c = jax.random.normal(k3, (13, d_c), dtype=jnp.float32)
    _check(x_c, params_c, d_c, "collapsed ragged")

    # 4) d above the collapse threshold -> factored 2-matmul path (nodes = 8)
    d_d = 300
    params_d = init_ae_params(kp3, d_d)
    x_d = jax.random.normal(k4, (13, d_d), dtype=jnp.float32)
    _check(x_d, params_d, d_d, "factored large-d")

    print("KERNEL_OK")
</pallas_src>

<mosaic_0001>
module attributes {stable_mosaic.version = 11 : i64} {
  func.func @_affine_kernel(%arg0: i32, %arg1: memref<8x128xf32, #tpu.memory_space<vmem>>, %arg2: memref<128x128xf32, #tpu.memory_space<vmem>>, %arg3: memref<1x128xf32, #tpu.memory_space<vmem>>, %arg4: memref<8x128xf32, #tpu.memory_space<vmem>>) attributes {dimension_semantics = [#tpu.dimension_semantics<parallel>], iteration_bounds = array<i64: 1>, scalar_prefetch = 0 : i64, scratch_operands = 0 : i64, tpu.core_type = #tpu.core_type<tc>, window_params = [{transform_indices = @transform_0, window_bounds = array<i64: 8, 128>}, {pipeline_mode = #tpu.pipeline_mode<synchronous>, transform_indices = @transform_1, window_bounds = array<i64: 128, 128>}, {pipeline_mode = #tpu.pipeline_mode<synchronous>, transform_indices = @transform_2, window_bounds = array<i64: 1, 128>}, {transform_indices = @transform_3, window_bounds = array<i64: 8, 128>}]} {
    %c0 = arith.constant 0 : index
    %c0_0 = arith.constant 0 : index
    %0 = vector.load %arg1[%c0, %c0_0] : memref<8x128xf32, #tpu.memory_space<vmem>>, vector<8x128xf32>
    %c0_1 = arith.constant 0 : index
    %c0_2 = arith.constant 0 : index
    %1 = vector.load %arg2[%c0_1, %c0_2] : memref<128x128xf32, #tpu.memory_space<vmem>>, vector<128x128xf32>
    %cst = arith.constant dense<0.000000e+00> : vector<8x128xf32>
    %2 = tpu.matmul %0, %1, %cst {dimension_numbers = #tpu.dot_dimension_numbers<[1], [0], [0], [1], [0, 0, 1, 1], [], []>} : vector<8x128xf32>, vector<128x128xf32>, vector<8x128xf32> -> vector<8x128xf32>
    %c0_3 = arith.constant 0 : index
    %c0_4 = arith.constant 0 : index
    %3 = vector.load %arg3[%c0_3, %c0_4] : memref<1x128xf32, #tpu.memory_space<vmem>>, vector<1x128xf32>
    %4 = vector.broadcast %3 : vector<1x128xf32> to vector<8x128xf32>
    %5 = arith.addf %2, %4 : vector<8x128xf32>
    %c0_5 = arith.constant 0 : index
    %c0_6 = arith.constant 0 : index
    %6 = vector.load %arg4[%c0_5, %c0_6] : memref<8x128xf32, #tpu.memory_space<vmem>>, vector<8x128xf32>
    tpu.vector_store %arg4[%c0_5, %c0_6], %5 {strides = array<i32>} : memref<8x128xf32, #tpu.memory_space<vmem>>, vector<8x128xf32>,
    return
  }
  func.func @transform_0(%arg0: i32) -> (i32, i32) {
    %c0_i32 = arith.constant 0 : i32
    %c0_i32_0 = arith.constant 0 : i32
    return %arg0, %c0_i32 : i32, i32
  }
  func.func @transform_1(%arg0: i32) -> (i32, i32) {
    %c0_i32 = arith.constant 0 : i32
    %c0_i32_0 = arith.constant 0 : i32
    %c0_i32_1 = arith.constant 0 : i32
    return %c0_i32, %c0_i32_0 : i32, i32
  }
  func.func @transform_2(%arg0: i32) -> (i32, i32) {
    %c0_i32 = arith.constant 0 : i32
    %c0_i32_0 = arith.constant 0 : i32
    %c0_i32_1 = arith.constant 0 : i32
    return %c0_i32, %c0_i32_0 : i32, i32
  }
  func.func @transform_3(%arg0: i32) -> (i32, i32) {
    %c0_i32 = arith.constant 0 : i32
    %c0_i32_0 = arith.constant 0 : i32
    return %arg0, %c0_i32 : i32, i32
  }
}

</mosaic_0001>

<bundles_post_ra>
// kernel: tpu_custom_call.1
= control target key start
LH: loop header
LB: loop body
LE: loop exit
PB: predicated region body
PF: predicated region fallthrough
CT: control target
= control target key end

     0   :  { %8 = vsyncpa [#allocation3], 0  ;;  %s390_s0 = inlined_call_operand.hbm [shape: f32[1,128], index: 0, kind: input, shape index: {}]   ;;  %s391_s1 = inlined_call_operand.hbm [shape: f32[128,128], index: 1, kind: input, shape index: {}]   ;;  %s392_s2 = inlined_call_operand.vmem [shape: f32[1,128], index: 2, kind: input, shape index: {}]   ;;  %s393_s3 = inlined_call_operand.hbm [shape: f32[1,128], index: 3, kind: output, shape index: {}]  }
   0x1   :  { %9 = vsyncpa [#allocation6], 0 }
   0x2   :  { %10 = vsyncpa [#allocation4], 0 }
   0x3   :  { %15 = vsyncadd [#allocation3], 112  ;;  %s315_s12 = smov [#allocation2]   ;;  %s243_s16 = scalar_lea.hbm %s390_s0, 16 }
   0x4   :  { %s16_s13 = sshll.u32 %s315_s12, 4  ;;  %p244_p0 = scmp.ne.s32.totalorder %s390_s0, %s243_s16  ;;  %s17_s13 = int_to_ptr.vmem [resolvable:$true] %s16_s13 }
   0x5   :  { %p247_p1 = scmp.lt.u32.totalorder %s243_s16, %s390_s0 }
   0x7   :  { %p249_p2 = pnand %p247_p1, %p244_p0 }
   0x9   :  { %252 = shalt.err (!%p249_p2)
}
   0xa   :  { %s253_s21 = scalar_lea.vmem %s17_s13, 16  ;;  %s257_s22 = scalar_lea.vmem %s17_s13, 128 }
   0xb   :  { %p254_p3 = scmp.ne.s32.totalorder %s17_s13, %s253_s21  ;;  %p258_p4 = scmp.lt.s32.totalorder %s17_s13, %s17_s13 }
   0xc   :  { %p259_p5 = scmp.lt.s32.totalorder %s257_s22, %s253_s21 }
   0xe   :  { %p260_p6 = por %p259_p5, %p258_p4 }
  0x10   :  { %p261_p7 = pnand %p260_p6, %p254_p3 }
  0x12   :  { %264 = shalt.err (!%p261_p7)
}
  0x13   :  { %s316_s23 = smov 16   ;;  %s317_s24 = smov 1  }
  0x14   :  { %22 = dma.hbm_to_vmem [thread:$0]  %s390_s0, 16, %s17_s13, [#allocation3], %s316_s23, %s316_s23, %s317_s24  }
  0x15   :  { %s318_s27 = smov [#allocation5]   ;;  %s265_s4 = scalar_lea.hbm %s391_s1, 2048 }
  0x16   :  { %s28_s28 = sshll.u32 %s318_s27, 4  ;;  %p266_p8 = scmp.ne.s32.totalorder %s391_s1, %s265_s4  ;;  %s29_s28 = int_to_ptr.vmem [resolvable:$true] %s28_s28 }
  0x17   :  { %p269_p9 = scmp.lt.u32.totalorder %s265_s4, %s391_s1 }
  0x19   :  { %p271_p10 = pnand %p269_p9, %p266_p8 }
  0x1b   :  { %274 = shalt.err (!%p271_p10)
}
  0x1c   :  { %s275_s9 = scalar_lea.vmem %s29_s28, 2048  ;;  %p280_p12 = scmp.lt.s32.totalorder %s29_s28, %s29_s28 }
  0x1d   :  { %p276_p11 = scmp.ne.s32.totalorder %s29_s28, %s275_s9  ;;  %p281_p13 = scmp.lt.s32.totalorder %s275_s9, %s275_s9 }
  0x1f   :  { %p282_p0 = por %p281_p13, %p280_p12 }
  0x21   :  { %p283_p1 = pnand %p282_p0, %p276_p11 }
  0x23   :  { %286 = shalt.err (!%p283_p1)
}
  0x24   :  { %s319_s0 = smov 128   ;;  %s320_s10 = smov 8  }
  0x25   :  { %34 = dma.hbm_to_vmem [thread:$0]  %s391_s1, 2048, %s29_s28, [#allocation6], %s319_s0, %s319_s0, %s320_s10  }
  0x26   :  { %309 = dma.done.wait [#allocation3], 128  }
  0x27   :  { %310 = vsyncadd [#allocation3], 4294967168 }
  0x28   :  { %311 = dma.done.wait [#allocation6], 2048  }
  0x29   :  { %312 = vsyncadd [#allocation6], 4294965248  ;;  %v321_v0 = vmov 0.0|0.0   ;;  %vm322_vm0 = vmmov 0   ;;  %v323_v1 = vmov 0.0   ;;  %v44_v2 = vld [vmem:[#allocation5] sm:$0xff] }
  0x2a   :  { %209 = vmatprep.subr.bf16.mxu0 %v321_v0  ;;  %206 = vmatprep.mubr.msk.f32.mxu0 %vm322_vm0, %v323_v1  ;;  %v45_v3 = vld [vmem:[#allocation5 + $0x8] sm:$0xff]  ;;  %v46_v4 = vld [vmem:[#allocation5 + $0x10] sm:$0xff]  ;;  %v47_v6 = vld [vmem:[#allocation5 + $0x18] sm:$0xff] }
  0x2b   :  { %v210_v5 = vpack.c.bf16 %v45_v3, %v44_v2  ;;  %v213_v7 = vpack.c.bf16 %v47_v6, %v46_v4  ;;  %v48_v8 = vld [vmem:[#allocation5 + $0x20] sm:$0xff]  ;;  %v49_v9 = vld [vmem:[#allocation5 + $0x28] sm:$0xff]  ;;  %v50_v11 = vld [vmem:[#allocation5 + $0x30] sm:$0xff] }
  0x2c   :  { %v216_v10 = vpack.c.bf16 %v49_v9, %v48_v8  ;;  %v51_v12 = vld [vmem:[#allocation5 + $0x38] sm:$0xff]  ;;  %v52_v14 = vld [vmem:[#allocation5 + $0x40] sm:$0xff]  ;;  %v53_v15 = vld [vmem:[#allocation5 + $0x48] sm:$0xff] }
  0x2d   :  { %211 = vmatpush3.bf16.msra.mxu0 %v210_v5  ;;  %v219_v13 = vpack.c.bf16 %v51_v12, %v50_v11  ;;  %v222_v16 = vpack.c.bf16 %v53_v15, %v52_v14  ;;  %v54_v17 = vld [vmem:[#allocation5 + $0x50] sm:$0xff]  ;;  %v55_v18 = vld [vmem:[#allocation5 + $0x58] sm:$0xff]  ;;  %v56_v20 = vld [vmem:[#allocation5 + $0x60] sm:$0xff] }
  0x2e   :  { %212 = vmatprep.subr.bf16.mxu0 %v321_v0  ;;  %v225_v19 = vpack.c.bf16 %v55_v18, %v54_v17  ;;  %v57_v21 = vld [vmem:[#allocation5 + $0x68] sm:$0xff]  ;;  %v58_v23 = vld [vmem:[#allocation5 + $0x70] sm:$0xff]  ;;  %v59_v24 = vld [vmem:[#allocation5 + $0x78] sm:$0xff] }
  0x2f   :  { %v228_v22 = vpack.c.bf16 %v57_v21, %v56_v20  ;;  %v231_v25 = vpack.c.bf16 %v59_v24, %v58_v23  ;;  %v43_v26 = vld [vmem:[#allocation2] sm:$0xff] }
  0x30   :  { %v156_v27 = vld [vmem:[%s392_s2] ss:$0 sm:$0xff] }
  0x31   :  { %214 = vmatpush3.bf16.msra.mxu0 %v213_v7 }
  0x32   :  { %215 = vmatprep.subr.bf16.mxu0 %v321_v0 }
  0x35   :  { %217 = vmatpush3.bf16.msra.mxu0 %v216_v10 }
  0x36   :  { %218 = vmatprep.subr.bf16.mxu0 %v321_v0 }
  0x39   :  { %220 = vmatpush3.bf16.msra.mxu0 %v219_v13 }
  0x3a   :  { %221 = vmatprep.subr.bf16.mxu0 %v321_v0 }
  0x3d   :  { %223 = vmatpush3.bf16.msra.mxu0 %v222_v16 }
  0x3e   :  { %224 = vmatprep.subr.bf16.mxu0 %v321_v0 }
  0x41   :  { %226 = vmatpush3.bf16.msra.mxu0 %v225_v19 }
  0x42   :  { %227 = vmatprep.subr.bf16.mxu0 %v321_v0 }
  0x45   :  { %229 = vmatpush3.bf16.msra.mxu0 %v228_v22 }
  0x46   :  { %230 = vmatprep.subr.bf16.mxu0 %v321_v0 }
  0x49   :  { %232 = vmatpush3.bf16.msra.mxu0 %v231_v25 }
  0x4c   :  { %207 = vmatmul.mubr.f32.vlgmr.msra.gmra.mrb[0].mxu0 %v43_v26 }
 0x11f   :  { %v133_v28 = vpop.f32.mrb[0].mxu0 }
 0x120   :  { %v134_v29 = vadd.f32 %v156_v27, %v133_v28  ;;  %v208_v30 = vpop.f32.mrb[1].mxu0 }
 0x122   :  { %137 = vst [vmem:[#allocation7] sm:$0xff] %v134_v29 }
 0x123   :  { %142 = vsyncadd [#allocation4], 112  ;;  %s324_s14 = smov [#allocation7]  }
 0x124   :  { %s143_s15 = sshll.u32 %s324_s14, 4  ;;  %s144_s15 = int_to_ptr.vmem [resolvable:$true] %s143_s15 }
 0x125   :  { %s287_s16 = scalar_lea.vmem %s144_s15, 16  ;;  %s291_s17 = scalar_lea.vmem %s144_s15, 128 }
 0x126   :  { %p288_p2 = scmp.ne.s32.totalorder %s144_s15, %s287_s16  ;;  %p292_p3 = scmp.lt.s32.totalorder %s144_s15, %s144_s15 }
 0x127   :  { %p293_p4 = scmp.lt.s32.totalorder %s291_s17, %s287_s16 }
 0x129   :  { %p294_p5 = por %p293_p4, %p292_p3 }
 0x12b   :  { %p295_p6 = pnand %p294_p5, %p288_p2 }
 0x12d   :  { %298 = shalt.err (!%p295_p6)
}
 0x12e   :  { %s299_s2 = scalar_lea.hbm %s393_s3, 16 }
 0x12f   :  { %p300_p7 = scmp.ne.s32.totalorder %s393_s3, %s299_s2  ;;  %p303_p8 = scmp.lt.u32.totalorder %s299_s2, %s393_s3 }
 0x131   :  { %p305_p9 = pnand %p303_p8, %p300_p7 }
 0x133   :  { %308 = shalt.err (!%p305_p9)
}
 0x134   :  { %149 = dma.vmem_to_hbm [thread:$0]  %s144_s15, 16, %s393_s3, [#allocation4], %s316_s23, %s316_s23, %s317_s24  }
 0x135   :  { %313 = dma.done.wait [#allocation4], 128  }
 0x136   :  { %314 = vsyncadd [#allocation4], 4294967168 }
 0x137   :  { %153 = vsyncpa [#allocation3], 1 }
 0x138   :  { %154 = vsyncpa [#allocation6], 1 }
 0x139   :  { %155 = vsyncpa [#allocation4], 1 }

</bundles_post_ra>
